<compile_context>
chip_gen: v7x
topology: tpu7x:2x2x1
jax: 0.10.0
libtpu: 0.0.40
codegen_flags: <defaults>
</compile_context>

<pallas_src>
import functools

import jax
import jax.numpy as jnp
from jax.experimental import pallas as pl
from jax.experimental.pallas import tpu as pltpu

HP = 128  # padded hidden / head lane width (one full vreg lane span)


def fair2vec_kernel(x_ref, w1_ref, b1_ref, w23_ref, b23_ref,
                    head_ref, emb_ref, *, num_targets):
    x = x_ref[...]                                                      # [TB, D]

    # Shared trunk: Linear(D, 50) + ReLU, computed on the 128-padded hidden.
    # Padded weight/bias columns are zero, so padded hidden columns stay 0 after relu.
    h = jnp.dot(x, w1_ref[...], preferred_element_type=jnp.float32)    # [TB, 128]
    x_shared = jnp.maximum(h + b1_ref[...], 0.0)

    # influencer_embedding = relu(relu(...)) == x_shared  (redundant relu dropped)
    emb_ref[...] = x_shared.astype(emb_ref.dtype)                       # unmasked 128-lane store

    # Fused heads: one matmul produces [influence logits (T) | fairness (1) | zero pad].
    head = jnp.dot(x_shared, w23_ref[...],
                   preferred_element_type=jnp.float32) + b23_ref[...]   # [TB, 128]

    # sigmoid only on the first T lanes; fairness (lane T) and padding stay raw.
    lane = jax.lax.broadcasted_iota(jnp.int32, head.shape, 1)
    head_out = jnp.where(lane < num_targets, jax.nn.sigmoid(head), head)
    head_ref[...] = head_out.astype(head_ref.dtype)                     # unmasked 128-lane store


def fair2vec_mtl(x, w1, b1, w2, b2, w3, b3, *, block_b=512):
    B, D = x.shape
    H = w1.shape[1]          # 50
    T = w2.shape[1]          # num_targets
    assert H <= HP and (T + 1) <= HP

    # ---- Wrapper-side layout plumbing: pad to 128 lanes, fuse the two heads. ----
    w1_p = jnp.zeros((D, HP), jnp.float32).at[:, :H].set(w1)
    b1_p = jnp.zeros((1, HP), jnp.float32).at[:, :H].set(jnp.reshape(b1, (1, H)))

    w23_p = (jnp.zeros((HP, HP), jnp.float32)
             .at[:H, :T].set(w2)                # influence head
             .at[:H, T:T + 1].set(w3))          # fairness head (column T)
    b23_p = (jnp.zeros((1, HP), jnp.float32)
             .at[:, :T].set(jnp.reshape(b2, (1, T)))
             .at[:, T:T + 1].set(jnp.reshape(b3, (1, 1))))

    # ---- Batch tiling: TB rows per grid step (multiple of 8 sublanes). ----
    tb = min(block_b, ((B + 7) // 8) * 8)
    b_pad = ((B + tb - 1) // tb) * tb
    x_p = x if b_pad == B else jnp.pad(x, ((0, b_pad - B), (0, 0)))

    batch_spec = lambda w: pl.BlockSpec((tb, w), lambda i: (i, 0))
    const_spec = lambda shape: pl.BlockSpec(shape, lambda i: (0, 0))  # resident across steps

    head_pad, emb_pad = pl.pallas_call(
        functools.partial(fair2vec_kernel, num_targets=T),
        out_shape=(
            jax.ShapeDtypeStruct((b_pad, HP), jnp.float32),   # [infl | fair | pad]
            jax.ShapeDtypeStruct((b_pad, HP), jnp.float32),   # [emb | pad]
        ),
        grid=(pl.cdiv(b_pad, tb),),
        in_specs=[
            batch_spec(D),
            const_spec((D, HP)), const_spec((1, HP)),
            const_spec((HP, HP)), const_spec((1, HP)),
        ],
        out_specs=(batch_spec(HP), batch_spec(HP)),
        compiler_params=pltpu.CompilerParams(
            dimension_semantics=("parallel",)),
    )(x_p, w1_p, b1_p, w23_p, b23_p)

    pred_influence = head_pad[:B, :T]
    pred_fairness = head_pad[:B, T:T + 1]
    influencer_embedding = emb_pad[:B, :H]
    return pred_influence, pred_fairness, influencer_embedding


def init_params(key, input_dim, hidden, num_targets):
    """Deterministic synthetic parameters (shapes match the nn.Module __init__)."""
    k1, k2, k3, k4, k5, k6 = jax.random.split(key, 6)
    w1 = jax.random.normal(k1, (input_dim, hidden), jnp.float32) * 0.1
    b1 = jax.random.normal(k2, (1, hidden), jnp.float32) * 0.1
    w2 = jax.random.normal(k3, (hidden, num_targets), jnp.float32) * 0.1
    b2 = jax.random.normal(k4, (1, num_targets), jnp.float32) * 0.1
    w3 = jax.random.normal(k5, (hidden, 1), jnp.float32) * 0.1
    b3 = jax.random.normal(k6, (1, 1), jnp.float32) * 0.1
    return w1, b1, w2, b2, w3, b3


def reference(x, w1, b1, w2, b2, w3, b3):
    x_shared = jax.nn.relu(x @ w1 + b1)
    emb = jax.nn.relu(x_shared)
    pred_infl = jax.nn.sigmoid(emb @ w2 + b2)
    pred_fair = x_shared @ w3 + b3
    return pred_infl, pred_fair, emb


if __name__ == "__main__":
    B, D, H, T = 8, 32, 50, 6   # batch, input_dim, hidden(=50), num_targets

    key = jax.random.PRNGKey(0)
    kx, kp = jax.random.split(key)
    x = jax.random.normal(kx, (B, D), jnp.float32)
    params = init_params(kp, D, H, T)

    pred_infl, pred_fair, emb = fair2vec_mtl(x, *params)
    jax.block_until_ready((pred_infl, pred_fair, emb))

    ref_infl, ref_fair, ref_emb = reference(x, *params)
    assert pred_infl.shape == (B, T) and pred_fair.shape == (B, 1) and emb.shape == (B, H)
    assert jnp.allclose(pred_infl, ref_infl, atol=1e-5, rtol=1e-5)
    assert jnp.allclose(pred_fair, ref_fair, atol=1e-5, rtol=1e-5)
    assert jnp.allclose(emb, ref_emb, atol=1e-5, rtol=1e-5)

    print("KERNEL_OK")
</pallas_src>

<mosaic_0001>
module attributes {stable_mosaic.version = 11 : i64} {
  func.func @fair2vec_kernel(%arg0: i32, %arg1: memref<8x32xf32, #tpu.memory_space<vmem>>, %arg2: memref<32x128xf32, #tpu.memory_space<vmem>>, %arg3: memref<1x128xf32, #tpu.memory_space<vmem>>, %arg4: memref<128x128xf32, #tpu.memory_space<vmem>>, %arg5: memref<1x128xf32, #tpu.memory_space<vmem>>, %arg6: memref<8x128xf32, #tpu.memory_space<vmem>>, %arg7: memref<8x128xf32, #tpu.memory_space<vmem>>) attributes {dimension_semantics = [#tpu.dimension_semantics<parallel>], iteration_bounds = array<i64: 1>, scalar_prefetch = 0 : i64, scratch_operands = 0 : i64, tpu.core_type = #tpu.core_type<tc>, window_params = [{transform_indices = @transform_0, window_bounds = array<i64: 8, 32>}, {pipeline_mode = #tpu.pipeline_mode<synchronous>, transform_indices = @transform_1, window_bounds = array<i64: 32, 128>}, {pipeline_mode = #tpu.pipeline_mode<synchronous>, transform_indices = @transform_2, window_bounds = array<i64: 1, 128>}, {pipeline_mode = #tpu.pipeline_mode<synchronous>, transform_indices = @transform_3, window_bounds = array<i64: 128, 128>}, {pipeline_mode = #tpu.pipeline_mode<synchronous>, transform_indices = @transform_4, window_bounds = array<i64: 1, 128>}, {transform_indices = @transform_5, window_bounds = array<i64: 8, 128>}, {transform_indices = @transform_6, window_bounds = array<i64: 8, 128>}]} {
    %c0 = arith.constant 0 : index
    %c0_0 = arith.constant 0 : index
    %0 = vector.load %arg1[%c0, %c0_0] : memref<8x32xf32, #tpu.memory_space<vmem>>, vector<8x32xf32>
    %c0_1 = arith.constant 0 : index
    %c0_2 = arith.constant 0 : index
    %1 = vector.load %arg2[%c0_1, %c0_2] : memref<32x128xf32, #tpu.memory_space<vmem>>, vector<32x128xf32>
    %cst = arith.constant dense<0.000000e+00> : vector<8x128xf32>
    %2 = tpu.matmul %0, %1, %cst {dimension_numbers = #tpu.dot_dimension_numbers<[1], [0], [0], [1], [0, 0, 1, 1], [], []>} : vector<8x32xf32>, vector<32x128xf32>, vector<8x128xf32> -> vector<8x128xf32>
    %c0_3 = arith.constant 0 : index
    %c0_4 = arith.constant 0 : index
    %3 = vector.load %arg3[%c0_3, %c0_4] : memref<1x128xf32, #tpu.memory_space<vmem>>, vector<1x128xf32>
    %4 = vector.broadcast %3 : vector<1x128xf32> to vector<8x128xf32>
    %5 = arith.addf %2, %4 : vector<8x128xf32>
    %cst_5 = arith.constant 0.000000e+00 : f32
    %6 = vector.broadcast %cst_5 : f32 to vector<8x128xf32>
    %7 = arith.maximumf %5, %6 : vector<8x128xf32>
    %c0_6 = arith.constant 0 : index
    %c0_7 = arith.constant 0 : index
    %8 = vector.load %arg7[%c0_6, %c0_7] : memref<8x128xf32, #tpu.memory_space<vmem>>, vector<8x128xf32>
    tpu.vector_store %arg7[%c0_6, %c0_7], %7 {strides = array<i32>} : memref<8x128xf32, #tpu.memory_space<vmem>>, vector<8x128xf32>,
    %c0_8 = arith.constant 0 : index
    %c0_9 = arith.constant 0 : index
    %9 = vector.load %arg4[%c0_8, %c0_9] : memref<128x128xf32, #tpu.memory_space<vmem>>, vector<128x128xf32>
    %cst_10 = arith.constant dense<0.000000e+00> : vector<8x128xf32>
    %10 = tpu.matmul %7, %9, %cst_10 {dimension_numbers = #tpu.dot_dimension_numbers<[1], [0], [0], [1], [0, 0, 1, 1], [], []>} : vector<8x128xf32>, vector<128x128xf32>, vector<8x128xf32> -> vector<8x128xf32>
    %c0_11 = arith.constant 0 : index
    %c0_12 = arith.constant 0 : index
    %11 = vector.load %arg5[%c0_11, %c0_12] : memref<1x128xf32, #tpu.memory_space<vmem>>, vector<1x128xf32>
    %12 = vector.broadcast %11 : vector<1x128xf32> to vector<8x128xf32>
    %13 = arith.addf %10, %12 : vector<8x128xf32>
    %14 = tpu.iota {dimensions = array<i32: 1>} : vector<8x128xi32>
    %c6_i32 = arith.constant 6 : i32
    %15 = vector.broadcast %c6_i32 : i32 to vector<8x128xi32>
    %16 = arith.cmpi slt, %14, %15 : vector<8x128xi32>
    %17 = arith.negf %13 : vector<8x128xf32>
    %18 = math.exp %17 : vector<8x128xf32>
    %cst_13 = arith.constant 1.000000e+00 : f32
    %19 = vector.broadcast %cst_13 : f32 to vector<8x128xf32>
    %20 = arith.addf %19, %18 : vector<8x128xf32>
    %21 = arith.divf %19, %20 : vector<8x128xf32>
    %22 = arith.select %16, %21, %13 : vector<8x128xi1>, vector<8x128xf32>
    %c0_14 = arith.constant 0 : index
    %c0_15 = arith.constant 0 : index
    %23 = vector.load %arg6[%c0_14, %c0_15] : memref<8x128xf32, #tpu.memory_space<vmem>>, vector<8x128xf32>
    tpu.vector_store %arg6[%c0_14, %c0_15], %22 {strides = array<i32>} : memref<8x128xf32, #tpu.memory_space<vmem>>, vector<8x128xf32>,
    return
  }
  func.func @transform_0(%arg0: i32) -> (i32, i32) {
    %c0_i32 = arith.constant 0 : i32
    %c0_i32_0 = arith.constant 0 : i32
    return %arg0, %c0_i32 : i32, i32
  }
  func.func @transform_1(%arg0: i32) -> (i32, i32) {
    %c0_i32 = arith.constant 0 : i32
    %c0_i32_0 = arith.constant 0 : i32
    %c0_i32_1 = arith.constant 0 : i32
    return %c0_i32, %c0_i32_0 : i32, i32
  }
  func.func @transform_2(%arg0: i32) -> (i32, i32) {
    %c0_i32 = arith.constant 0 : i32
    %c0_i32_0 = arith.constant 0 : i32
    %c0_i32_1 = arith.constant 0 : i32
    return %c0_i32, %c0_i32_0 : i32, i32
  }
  func.func @transform_3(%arg0: i32) -> (i32, i32) {
    %c0_i32 = arith.constant 0 : i32
    %c0_i32_0 = arith.constant 0 : i32
    %c0_i32_1 = arith.constant 0 : i32
    return %c0_i32, %c0_i32_0 : i32, i32
  }
  func.func @transform_4(%arg0: i32) -> (i32, i32) {
    %c0_i32 = arith.constant 0 : i32
    %c0_i32_0 = arith.constant 0 : i32
    %c0_i32_1 = arith.constant 0 : i32
    return %c0_i32, %c0_i32_0 : i32, i32
  }
  func.func @transform_5(%arg0: i32) -> (i32, i32) {
    %c0_i32 = arith.constant 0 : i32
    %c0_i32_0 = arith.constant 0 : i32
    return %arg0, %c0_i32 : i32, i32
  }
  func.func @transform_6(%arg0: i32) -> (i32, i32) {
    %c0_i32 = arith.constant 0 : i32
    %c0_i32_0 = arith.constant 0 : i32
    return %arg0, %c0_i32 : i32, i32
  }
}

</mosaic_0001>

<bundles_post_ra>
// kernel: tpu_custom_call.1
= control target key start
LH: loop header
LB: loop body
LE: loop exit
PB: predicated region body
PF: predicated region fallthrough
CT: control target
= control target key end

     0   :  { %12 = vsyncpa [#allocation3], 0  ;;  %s636_s0 = inlined_call_operand.hbm [shape: f32[8,32], index: 0, kind: input, shape index: {}]   ;;  %s637_s1 = inlined_call_operand.hbm [shape: f32[32,128], index: 1, kind: input, shape index: {}]   ;;  %s638_s2 = inlined_call_operand.vmem [shape: f32[1,128], index: 2, kind: input, shape index: {}]   ;;  %s639_s3 = inlined_call_operand.hbm [shape: f32[128,128], index: 3, kind: input, shape index: {}]   ;;  %s640_s4 = inlined_call_operand.vmem [shape: f32[1,128], index: 4, kind: input, shape index: {}]   ;;  %s641_s5 = inlined_call_operand.hbm [shape: f32[8,128], index: 5, kind: output, shape index: {0}]   ;;  %s642_s6 = inlined_call_operand.hbm [shape: f32[8,128], index: 6, kind: output, shape index: {1}]  }
   0x1   :  { %13 = vsyncpa [#allocation6], 0 }
   0x2   :  { %14 = vsyncpa [#allocation4], 0 }
   0x3   :  { %15 = vsyncpa [#allocation10], 0  ;;  %s519_s21 = smov [#allocation5]   ;;  %s401_s25 = scalar_lea.hbm %s637_s1, 512 }
   0x4   :  { %s31_s22 = sshll.u32 %s519_s21, 4  ;;  %p402_p0 = scmp.ne.s32.totalorder %s637_s1, %s401_s25  ;;  %s32_s22 = int_to_ptr.vmem [resolvable:$true] %s31_s22 }
   0x5   :  { %p405_p1 = scmp.lt.u32.totalorder %s401_s25, %s637_s1 }
   0x7   :  { %p407_p2 = pnand %p405_p1, %p402_p0 }
   0x9   :  { %410 = shalt.err (!%p407_p2)
}
   0xa   :  { %s411_s30 = scalar_lea.vmem %s32_s22, 512  ;;  %p416_p4 = scmp.lt.s32.totalorder %s32_s22, %s32_s22 }
   0xb   :  { %p412_p3 = scmp.ne.s32.totalorder %s32_s22, %s411_s30  ;;  %p417_p5 = scmp.lt.s32.totalorder %s411_s30, %s411_s30 }
   0xd   :  { %p418_p6 = por %p417_p5, %p416_p4 }
   0xf   :  { %p419_p7 = pnand %p418_p6, %p412_p3 }
  0x11   :  { %422 = shalt.err (!%p419_p7)
}
  0x12   :  { %s520_s7 = smov 128   ;;  %s521_s8 = smov 8  }
  0x13   :  { %37 = dma.hbm_to_vmem [thread:$0]  %s637_s1, 512, %s32_s22, [#allocation6], %s520_s7, %s520_s7, %s521_s8  }
  0x14   :  { %s522_s11 = smov [#allocation2]   ;;  %s523_s13 = smov [#allocation7]  }
  0x15   :  { %s22_s12 = sshll.u32 %s522_s11, 4  ;;  %s45_s14 = sshll.u32 %s523_s13, 4  ;;  %s23_s12 = int_to_ptr.vmem [resolvable:$true] %s22_s12  ;;  %s46_s14 = int_to_ptr.vmem [resolvable:$true] %s45_s14 }
  0x16   :  { %s423_s17 = scalar_lea.hbm %s636_s0, 128 }
  0x17   :  { %p424_p8 = scmp.ne.s32.totalorder %s636_s0, %s423_s17  ;;  %p427_p9 = scmp.lt.u32.totalorder %s423_s17, %s636_s0 }
  0x19   :  { %p429_p10 = pnand %p427_p9, %p424_p8 }
  0x1b   :  { %432 = shalt.err (!%p429_p10)
}
  0x1c   :  { %s433_s1 = scalar_lea.vmem %s23_s12, 128  ;;  %p438_p12 = scmp.lt.s32.totalorder %s23_s12, %s23_s12 }
  0x1d   :  { %p434_p11 = scmp.ne.s32.totalorder %s23_s12, %s433_s1  ;;  %p439_p13 = scmp.lt.s32.totalorder %s433_s1, %s433_s1 }
  0x1f   :  { %p440_p0 = por %p439_p13, %p438_p12 }
  0x21   :  { %p441_p1 = pnand %p440_p0, %p434_p11 }
  0x23   :  { %444 = shalt.err (!%p441_p1)
}
  0x24   :  { %25 = dma.hbm_to_vmem [thread:$0]  %s636_s0, 128, %s23_s12, [#allocation3]  }
  0x25   :  { %s445_s26 = scalar_lea.hbm %s639_s3, 2048 }
  0x26   :  { %p446_p2 = scmp.ne.s32.totalorder %s639_s3, %s445_s26  ;;  %p449_p3 = scmp.lt.u32.totalorder %s445_s26, %s639_s3 }
  0x28   :  { %p451_p4 = pnand %p449_p3, %p446_p2 }
  0x2a   :  { %454 = shalt.err (!%p451_p4)
}
  0x2b   :  { %s455_s9 = scalar_lea.vmem %s46_s14, 2048  ;;  %p460_p6 = scmp.lt.s32.totalorder %s46_s14, %s46_s14 }
  0x2c   :  { %p456_p5 = scmp.ne.s32.totalorder %s46_s14, %s455_s9  ;;  %p461_p7 = scmp.lt.s32.totalorder %s455_s9, %s455_s9 }
  0x2e   :  { %p462_p8 = por %p461_p7, %p460_p6 }
  0x30   :  { %p463_p9 = pnand %p462_p8, %p456_p5 }
  0x32   :  { %466 = shalt.err (!%p463_p9)
}
  0x33   :  { %51 = dma.hbm_to_vmem [thread:$0]  %s639_s3, 2048, %s46_s14, [#allocation6], %s520_s7, %s520_s7, %s521_s8  }
  0x34   :  { %511 = dma.done.wait [#allocation3], 128  }
  0x35   :  { %512 = vsyncadd [#allocation3], 4294967168 }
  0x36   :  { %513 = dma.done.wait [#allocation6], 2560  }
  0x37   :  { %514 = vsyncadd [#allocation6], 4294964736  ;;  %v524_v0 = vmov 0.0|0.0   ;;  %vm525_vm0 = vmmov 0   ;;  %v526_v1 = vmov 0.0   ;;  %v64_v2 = vld [vmem:[#allocation5] sm:$0xff] }
  0x38   :  { %357 = vmatprep.subr.bf16.mxu0 %v524_v0  ;;  %319 = vmatprep.mubr.msk.f32.mxu0 %vm525_vm0, %v526_v1  ;;  %v65_v3 = vld [vmem:[#allocation5 + $0x8] sm:$0xff]  ;;  %v66_v4 = vld [vmem:[#allocation5 + $0x10] sm:$0xff]  ;;  %v67_v6 = vld [vmem:[#allocation5 + $0x18] sm:$0xff]  ;;  %vm75_vm1 = vcmask 261120   ;;  %s527_s8 = smov [#allocation9]  }
  0x39   :  { %363 = vmatprep.subr.bf16.mxu1 %v524_v0  ;;  %354 = vmatprep.mubr.msk.f32.mxu1 %vm525_vm0, %v526_v1  ;;  %v358_v5 = vpack.c.bf16 %v65_v3, %v64_v2  ;;  %v151_v7 = vld [vmem:[#allocation7] sm:$0xff]  ;;  %v152_v8 = vld [vmem:[#allocation7 + $0x8] sm:$0xff]  ;;  %v153_v9 = vld [vmem:[#allocation7 + $0x10] sm:$0xff]  ;;  %v361_v11 = vpack.c.bf16 %v67_v6, %v66_v4  ;;  %s271_s11 = sshll.u32 %s527_s8, 4  ;;  %s272_s11 = int_to_ptr.vmem [resolvable:$true] %s271_s11 }
  0x3a   :  { %v154_v10 = vld [vmem:[#allocation7 + $0x18] sm:$0xff]  ;;  %v364_v12 = vpack.c.bf16 %v152_v8, %v151_v7  ;;  %v155_v14 = vld [vmem:[#allocation7 + $0x20] sm:$0xff]  ;;  %v156_v15 = vld [vmem:[#allocation7 + $0x28] sm:$0xff]  ;;  %s467_s12 = scalar_lea.vmem %s272_s11, 128  ;;  %p472_p11 = scmp.lt.s32.totalorder %s272_s11, %s272_s11 }
  0x3b   :  { %359 = vmatpush3.bf16.msra.mxu0 %v358_v5  ;;  %v367_v13 = vpack.c.bf16 %v154_v10, %v153_v9  ;;  %v63_v16 = vld [vmem:[#allocation2] sm:$0xff]  ;;  %v370_v17 = vpack.c.bf16 %v156_v15, %v155_v14  ;;  %v157_v18 = vld [vmem:[#allocation7 + $0x30] sm:$0xff]  ;;  %v159_v21 = vld [vmem:[#allocation7 + $0x40] sm:$0xff]  ;;  %p468_p10 = scmp.ne.s32.totalorder %s272_s11, %s467_s12  ;;  %p473_p12 = scmp.lt.s32.totalorder %s467_s12, %s467_s12 }
  0x3c   :  { %360 = vmatprep.subr.bf16.mxu0 %v524_v0  ;;  %365 = vmatpush3.bf16.msra.mxu1 %v364_v12  ;;  %v158_v19 = vld [vmem:[#allocation7 + $0x38] sm:$0xff]  ;;  %v160_v22 = vld [vmem:[#allocation7 + $0x48] sm:$0xff]  ;;  %v161_v24 = vld [vmem:[#allocation7 + $0x50] sm:$0xff] }
  0x3d   :  { %366 = vmatprep.subr.bf16.mxu1 %v524_v0  ;;  %v373_v20 = vpack.c.bf16 %v158_v19, %v157_v18  ;;  %v376_v23 = vpack.c.bf16 %v160_v22, %v159_v21  ;;  %v162_v25 = vld [vmem:[#allocation7 + $0x58] sm:$0xff]  ;;  %v163_v27 = vld [vmem:[#allocation7 + $0x60] sm:$0xff]  ;;  %v164_v28 = vld [vmem:[#allocation7 + $0x68] sm:$0xff]  ;;  %p474_p13 = por %p473_p12, %p472_p11 }
  0x3e   :  { %v379_v26 = vpack.c.bf16 %v162_v25, %v161_v24  ;;  %v382_v29 = vpack.c.bf16 %v164_v28, %v163_v27  ;;  %v165_v30 = vld [vmem:[#allocation7 + $0x70] sm:$0xff]  ;;  %v166_v31 = vld [vmem:[#allocation7 + $0x78] sm:$0xff] }
  0x3f   :  { %362 = vmatpush3.bf16.msra.mxu0 %v361_v11  ;;  %v385_v32 = vpack.c.bf16 %v166_v31, %v165_v30  ;;  %v285_v33 = vld [vmem:[%s638_s2] ss:$0 sm:$0xff]  ;;  %p475_p0 = pnand %p474_p13, %p468_p10 }
  0x40   :  { %368 = vmatpush3.bf16.msra.mxu1 %v367_v13 }
  0x41   :  { %369 = vmatprep.subr.bf16.mxu1 %v524_v0 }
  0x42   :  { %320 = vmatmul.mubr.msk.f32.vlgmr.msra.gmra.mrb[0].mxu0 %vm75_vm1, %v63_v16 }
  0x44   :  { %371 = vmatpush3.bf16.msra.mxu1 %v370_v17 }
  0x45   :  { %372 = vmatprep.subr.bf16.mxu1 %v524_v0 }
  0x48   :  { %374 = vmatpush3.bf16.msra.mxu1 %v373_v20 }
  0x49   :  { %375 = vmatprep.subr.bf16.mxu1 %v524_v0 }
  0x4c   :  { %377 = vmatpush3.bf16.msra.mxu1 %v376_v23 }
  0x4d   :  { %378 = vmatprep.subr.bf16.mxu1 %v524_v0 }
  0x50   :  { %380 = vmatpush3.bf16.msra.mxu1 %v379_v26 }
  0x51   :  { %381 = vmatprep.subr.bf16.mxu1 %v524_v0 }
  0x54   :  { %383 = vmatpush3.bf16.msra.mxu1 %v382_v29 }
  0x55   :  { %384 = vmatprep.subr.bf16.mxu1 %v524_v0 }
  0x58   :  { %386 = vmatpush3.bf16.msra.mxu1 %v385_v32 }
 0x115   :  { %v145_v34 = vpop.f32.mrb[0].mxu0 }
 0x116   :  { %v146_v35 = vadd.f32 %v285_v33, %v145_v34  ;;  %v321_v36 = vpop.f32.mrb[1].mxu0 }
 0x118   :  { %v149_v37 = vmax.f32 %v146_v35, 0.0 }
 0x11a   :  { %150 = vst [vmem:[#allocation9] sm:$0xff] %v149_v37  ;;  %355 = vmatmul.mubr.f32.vlgmr.msra.gmra.mrb[0].mxu1 %v149_v37 }
 0x11b   :  { %478 = shalt.err (!%p475_p0)
}
 0x11c   :  { %s479_s2 = scalar_lea.hbm %s642_s6, 128 }
 0x11d   :  { %p480_p1 = scmp.ne.s32.totalorder %s642_s6, %s479_s2  ;;  %p483_p2 = scmp.lt.u32.totalorder %s479_s2, %s642_s6 }
 0x11f   :  { %p485_p3 = pnand %p483_p2, %p480_p1 }
 0x121   :  { %488 = shalt.err (!%p485_p3)
}
 0x122   :  { %274 = dma.vmem_to_hbm [thread:$0]  %s272_s11, 128, %s642_s6, [#allocation10]   ;;  %v287_v38 = vld [vmem:[%s640_s4] ss:$0 sm:$0xff]  ;;  %v244_v45 = vlaneseq }
 0x123   :  { %s528_s22 = smov [#allocation8]  }
 0x124   :  { %v245_v46 = vand.u32 127, %v244_v45  ;;  %s261_s23 = sshll.u32 %s528_s22, 4  ;;  %s262_s23 = int_to_ptr.vmem [resolvable:$true] %s261_s23 }
 0x125   :  { %s489_s6 = scalar_lea.vmem %s262_s23, 128  ;;  %p494_p5 = scmp.lt.s32.totalorder %s262_s23, %s262_s23 }
 0x126   :  { %vm246_vm2 = vcmp.lt.s32.totalorder %v245_v46, 6  ;;  %p490_p4 = scmp.ne.s32.totalorder %s262_s23, %s489_s6  ;;  %p495_p6 = scmp.lt.s32.totalorder %s489_s6, %s489_s6 }
 0x128   :  { %p496_p7 = por %p495_p6, %p494_p5 }
 0x12a   :  { %p497_p8 = pnand %p496_p7, %p490_p4 }
 0x1ed   :  { %v240_v39 = vpop.f32.mrb[0].mxu1 }
 0x1ee   :  { %v241_v40 = vadd.f32 %v287_v38, %v240_v39  ;;  %v356_v41 = vpop.f32.mrb[1].mxu1 }
 0x1f0   :  { %v288_v42 = vmul.f32 -1.442695, %v241_v40 }
 0x1f2   :  { %397 = vpow2.f32 %v288_v42 }
 0x1fc   :  { %v398_v43 = vpop.eup %397 }
 0x1fd   :  { %v250_v44 = vadd.f32 1.0, %v398_v43 }
 0x1ff   :  { %399 = vrcp.f32 %v250_v44 }
 0x209   :  { %v400_v47 = vpop.eup %399 }
 0x20a   :  { %v253_v48 = vsel %vm246_vm2, %v400_v47, %v241_v40 }
 0x20b   :  { %254 = vst [vmem:[#allocation8] sm:$0xff] %v253_v48 }
 0x20c   :  { %500 = shalt.err (!%p497_p8)
}
 0x20d   :  { %s501_s25 = scalar_lea.hbm %s641_s5, 128 }
 0x20e   :  { %p502_p9 = scmp.ne.s32.totalorder %s641_s5, %s501_s25  ;;  %p505_p10 = scmp.lt.u32.totalorder %s501_s25, %s641_s5 }
 0x210   :  { %p507_p11 = pnand %p505_p10, %p502_p9 }
 0x212   :  { %510 = shalt.err (!%p507_p11)
}
 0x213   :  { %264 = dma.vmem_to_hbm [thread:$0]  %s262_s23, 128, %s641_s5, [#allocation4]  }
 0x214   :  { %515 = dma.done.wait [#allocation4], 128  }
 0x215   :  { %516 = vsyncadd [#allocation4], 4294967168 }
 0x216   :  { %517 = dma.done.wait [#allocation10], 128  }
 0x217   :  { %518 = vsyncadd [#allocation10], 4294967168 }
 0x218   :  { %281 = vsyncpa [#allocation3], 1 }
 0x219   :  { %282 = vsyncpa [#allocation6], 1 }
 0x21a   :  { %283 = vsyncpa [#allocation4], 1 }
 0x21b   :  { %284 = vsyncpa [#allocation10], 1 }

</bundles_post_ra>
